<compile_context>
chip_gen: v7x
topology: tpu7x:2x2x1
jax: 0.10.0
libtpu: 0.0.40
codegen_flags: <defaults>
</compile_context>

<pallas_src>
import jax
import jax.numpy as jnp
from jax.experimental import pallas as pl
from jax.experimental.pallas import tpu as pltpu

LANES = 128
MAX_TM = 1024      # rows per tile (512 KiB per f32 input block)
N_SPLIT = 2        # parallel grid splits (feeds both TCs on v7x)
PAD_LOGIT = -1e4   # sigmoid(PAD_LOGIT) underflows to exactly 0 in f32


def _round_up(x: int, m: int) -> int:
    return ((x + m - 1) // m) * m


def _iou_kernel(x_ref, t_ref, inter_ref, psum_ref):
    """Accumulate sum(p*t) and sum(p+t) into (8,128) per-split accumulators."""
    i = pl.program_id(1)

    @pl.when(i == 0)
    def _():
        inter_ref[...] = jnp.zeros_like(inter_ref)
        psum_ref[...] = jnp.zeros_like(psum_ref)

    p = jax.nn.sigmoid(x_ref[...].astype(jnp.float32))
    t = t_ref[...].astype(jnp.float32)

    # (tm,128) -> (tm//8, 8, 128); sum over vreg groups stays on the VPU.
    inter_ref[...] += jnp.sum((p * t).reshape(-1, 8, LANES), axis=0)
    psum_ref[...] += jnp.sum((p + t).reshape(-1, 8, LANES), axis=0)


def iou_loss(inputs, target, size_average=True):
    """JAX/Pallas equivalent of IoULoss.forward (returns a scalar)."""
    assert inputs.shape == target.shape
    batch = inputs.shape[0]

    x = inputs.reshape(-1)
    t = target.reshape(-1)
    n = x.shape[0]

    rows_needed = pl.cdiv(n, LANES)
    # Multiple of 32 keeps the tile legal for f32 / bf16 / int8 inputs.
    tm = min(MAX_TM, _round_up(pl.cdiv(rows_needed, N_SPLIT), 32))
    rows_total = _round_up(rows_needed, N_SPLIT * tm)
    tiles_per_split = rows_total // (N_SPLIT * tm)
    n_pad = rows_total * LANES - n

    # Negative-pad logits / zero-pad targets: padded elements contribute 0.
    x = jnp.pad(x, (0, n_pad), constant_values=PAD_LOGIT).reshape(rows_total, LANES)
    t = jnp.pad(t, (0, n_pad), constant_values=0).reshape(rows_total, LANES)

    in_spec = pl.BlockSpec(
        (tm, LANES), lambda s, i: (s * tiles_per_split + i, 0))
    acc_spec = pl.BlockSpec((8, LANES), lambda s, i: (s, 0))

    inter_acc, psum_acc = pl.pallas_call(
        _iou_kernel,
        out_shape=(
            jax.ShapeDtypeStruct((N_SPLIT * 8, LANES), jnp.float32),
            jax.ShapeDtypeStruct((N_SPLIT * 8, LANES), jnp.float32),
        ),
        grid_spec=pltpu.PrefetchScalarGridSpec(
            num_scalar_prefetch=0,
            grid=(N_SPLIT, tiles_per_split),
            in_specs=[in_spec, in_spec],
            out_specs=(acc_spec, acc_spec),
        ),
        compiler_params=pltpu.CompilerParams(
            dimension_semantics=("parallel", "arbitrary")),
    )(x, t)

    inter = jnp.sum(inter_acc)
    union = jnp.sum(psum_acc) - inter
    iou = inter / union
    iou_dual = batch - iou
    if size_average:
        iou_dual = iou_dual / batch
    return iou_dual


def iou_loss_ref(inputs, target, size_average=True):
    p = jax.nn.sigmoid(inputs.astype(jnp.float32))
    t = target.astype(jnp.float32)
    inter = jnp.sum(p * t)
    union = jnp.sum(p + t - p * t)
    iou = inter / union
    iou_dual = inputs.shape[0] - iou
    if size_average:
        iou_dual = iou_dual / inputs.shape[0]
    return iou_dual


if __name__ == "__main__":
    key = jax.random.PRNGKey(0)
    k1, k2 = jax.random.split(key)
    B, C, H, W = 2, 4, 16, 16  # NCHW, matching the PyTorch convention
    logits = jax.random.normal(k1, (B, C, H, W), dtype=jnp.float32)
    target = (jax.random.uniform(k2, (B, C, H, W)) > 0.5).astype(jnp.float32)

    loss = jax.block_until_ready(iou_loss(logits, target, size_average=True))
    ref = iou_loss_ref(logits, target, size_average=True)

    assert jnp.allclose(loss, ref, rtol=1e-5, atol=1e-5), (loss, ref)
    print("KERNEL_OK")
</pallas_src>

<mosaic_0001>
module attributes {stable_mosaic.version = 11 : i64} {
  func.func @_iou_kernel(%arg0: i32, %arg1: i32, %arg2: memref<32x128xf32, #tpu.memory_space<vmem>>, %arg3: memref<32x128xf32, #tpu.memory_space<vmem>>, %arg4: memref<8x128xf32, #tpu.memory_space<vmem>>, %arg5: memref<8x128xf32, #tpu.memory_space<vmem>>) attributes {dimension_semantics = [#tpu.dimension_semantics<parallel>, #tpu.dimension_semantics<arbitrary>], iteration_bounds = array<i64: 2, 1>, scalar_prefetch = 0 : i64, scratch_operands = 0 : i64, tpu.core_type = #tpu.core_type<tc>, window_params = [{transform_indices = @transform_0, window_bounds = array<i64: 32, 128>}, {transform_indices = @transform_1, window_bounds = array<i64: 32, 128>}, {transform_indices = @transform_2, window_bounds = array<i64: 8, 128>}, {transform_indices = @transform_3, window_bounds = array<i64: 8, 128>}]} {
    %c0_i32 = arith.constant 0 : i32
    %0 = arith.cmpi eq, %arg1, %c0_i32 : i32
    %1 = arith.extui %0 : i1 to i32
    %c0_i32_0 = arith.constant 0 : i32
    %2 = arith.cmpi ne, %1, %c0_i32_0 : i32
    scf.if %2 {
      %cst_14 = arith.constant 0.000000e+00 : f32
      %22 = vector.broadcast %cst_14 : f32 to vector<8x128xf32>
      %c0_15 = arith.constant 0 : index
      %c0_16 = arith.constant 0 : index
      %23 = vector.load %arg4[%c0_15, %c0_16] : memref<8x128xf32, #tpu.memory_space<vmem>>, vector<8x128xf32>
      tpu.vector_store %arg4[%c0_15, %c0_16], %22 {strides = array<i32>} : memref<8x128xf32, #tpu.memory_space<vmem>>, vector<8x128xf32>,
      %cst_17 = arith.constant 0.000000e+00 : f32
      %24 = vector.broadcast %cst_17 : f32 to vector<8x128xf32>
      %c0_18 = arith.constant 0 : index
      %c0_19 = arith.constant 0 : index
      %25 = vector.load %arg5[%c0_18, %c0_19] : memref<8x128xf32, #tpu.memory_space<vmem>>, vector<8x128xf32>
      tpu.vector_store %arg5[%c0_18, %c0_19], %24 {strides = array<i32>} : memref<8x128xf32, #tpu.memory_space<vmem>>, vector<8x128xf32>,
    } else {
    }
    %c0 = arith.constant 0 : index
    %c0_1 = arith.constant 0 : index
    %3 = vector.load %arg2[%c0, %c0_1] : memref<32x128xf32, #tpu.memory_space<vmem>>, vector<32x128xf32>
    %4 = arith.negf %3 : vector<32x128xf32>
    %5 = math.exp %4 : vector<32x128xf32>
    %cst = arith.constant 1.000000e+00 : f32
    %6 = vector.broadcast %cst : f32 to vector<32x128xf32>
    %7 = arith.addf %6, %5 : vector<32x128xf32>
    %8 = arith.divf %6, %7 : vector<32x128xf32>
    %c0_2 = arith.constant 0 : index
    %c0_3 = arith.constant 0 : index
    %9 = vector.load %arg3[%c0_2, %c0_3] : memref<32x128xf32, #tpu.memory_space<vmem>>, vector<32x128xf32>
    %c0_4 = arith.constant 0 : index
    %c0_5 = arith.constant 0 : index
    %10 = vector.load %arg4[%c0_4, %c0_5] : memref<8x128xf32, #tpu.memory_space<vmem>>, vector<8x128xf32>
    %11 = arith.mulf %8, %9 : vector<32x128xf32>
    %12 = vector.shape_cast %11 : vector<32x128xf32> to vector<4x8x128xf32>
    %cst_6 = arith.constant dense<0.000000e+00> : vector<8x128xf32>
    %13 = vector.multi_reduction <add>, %12, %cst_6 [0] : vector<4x8x128xf32> to vector<8x128xf32>
    %14 = arith.addf %10, %13 : vector<8x128xf32>
    %c0_7 = arith.constant 0 : index
    %c0_8 = arith.constant 0 : index
    %15 = vector.load %arg4[%c0_7, %c0_8] : memref<8x128xf32, #tpu.memory_space<vmem>>, vector<8x128xf32>
    tpu.vector_store %arg4[%c0_7, %c0_8], %14 {strides = array<i32>} : memref<8x128xf32, #tpu.memory_space<vmem>>, vector<8x128xf32>,
    %c0_9 = arith.constant 0 : index
    %c0_10 = arith.constant 0 : index
    %16 = vector.load %arg5[%c0_9, %c0_10] : memref<8x128xf32, #tpu.memory_space<vmem>>, vector<8x128xf32>
    %17 = arith.addf %8, %9 : vector<32x128xf32>
    %18 = vector.shape_cast %17 : vector<32x128xf32> to vector<4x8x128xf32>
    %cst_11 = arith.constant dense<0.000000e+00> : vector<8x128xf32>
    %19 = vector.multi_reduction <add>, %18, %cst_11 [0] : vector<4x8x128xf32> to vector<8x128xf32>
    %20 = arith.addf %16, %19 : vector<8x128xf32>
    %c0_12 = arith.constant 0 : index
    %c0_13 = arith.constant 0 : index
    %21 = vector.load %arg5[%c0_12, %c0_13] : memref<8x128xf32, #tpu.memory_space<vmem>>, vector<8x128xf32>
    tpu.vector_store %arg5[%c0_12, %c0_13], %20 {strides = array<i32>} : memref<8x128xf32, #tpu.memory_space<vmem>>, vector<8x128xf32>,
    return
  }
  func.func @transform_0(%arg0: i32, %arg1: i32) -> (i32, i32) {
    %c1_i32 = arith.constant 1 : i32
    %0 = arith.muli %arg0, %c1_i32 : i32
    %1 = arith.addi %0, %arg1 : i32
    %c0_i32 = arith.constant 0 : i32
    %c0_i32_0 = arith.constant 0 : i32
    return %1, %c0_i32 : i32, i32
  }
  func.func @transform_1(%arg0: i32, %arg1: i32) -> (i32, i32) {
    %c1_i32 = arith.constant 1 : i32
    %0 = arith.muli %arg0, %c1_i32 : i32
    %1 = arith.addi %0, %arg1 : i32
    %c0_i32 = arith.constant 0 : i32
    %c0_i32_0 = arith.constant 0 : i32
    return %1, %c0_i32 : i32, i32
  }
  func.func @transform_2(%arg0: i32, %arg1: i32) -> (i32, i32) {
    %c0_i32 = arith.constant 0 : i32
    %c0_i32_0 = arith.constant 0 : i32
    return %arg0, %c0_i32 : i32, i32
  }
  func.func @transform_3(%arg0: i32, %arg1: i32) -> (i32, i32) {
    %c0_i32 = arith.constant 0 : i32
    %c0_i32_0 = arith.constant 0 : i32
    return %arg0, %c0_i32 : i32, i32
  }
}

</mosaic_0001>

<bundles_post_ra>
// kernel: tpu_custom_call.1
= control target key start
LH: loop header
LB: loop body
LE: loop exit
PB: predicated region body
PF: predicated region fallthrough
CT: control target
= control target key end

     0   :  { %9 = vsyncpa [#allocation3], 0  ;;  %s1081_s0 = inlined_call_operand.hbm [shape: f32[64,128], index: 0, kind: input, shape index: {}]   ;;  %s1082_s1 = inlined_call_operand.hbm [shape: f32[64,128], index: 1, kind: input, shape index: {}]   ;;  %s1083_s2 = inlined_call_operand.hbm [shape: f32[16,128], index: 2, kind: output, shape index: {0}]   ;;  %s1084_s3 = inlined_call_operand.hbm [shape: f32[16,128], index: 3, kind: output, shape index: {1}]  }
   0x1   :  { %11 = vsyncpa [#allocation3 + $0x1], 0 }
   0x2   :  { %12 = vsyncpa [#allocation6], 0 }
   0x3   :  { %14 = vsyncpa [#allocation6 + $0x1], 0 }
   0x4   :  { %15 = vsyncpa [#allocation4], 0 }
   0x5   :  { %17 = vsyncpa [#allocation4 + $0x1], 0 }
   0x6   :  { %18 = vsyncpa [#allocation9], 0 }
   0x7   :  { %20 = vsyncpa [#allocation9 + $0x1], 0  ;;  %s811_s12 = smov 0   ;;  %s813_s13 = smov 0  }
   0x8   :  { %s815_s14 = smov 0   ;;  %s817_s15 = smov 0  }
   0x9   :  { %s819_s16 = smov 0   ;;  %s821_s17 = smov 0  }
   0xa LB: > { %s487_s18 = sadd.s32 4294967295, %s783_s17   ;;  %s488_s19 = sadd.s32 4294967294, %s783_s17   ;;  %s783_s17 = sphi %s821_s17, %s26_s17   ;;  %s779_s16 = sphi %s819_s16, %s1102_s16   ;;  %s775_s15 = sphi %s817_s15, %s1101_s15   ;;  %s771_s14 = sphi %s815_s14, %s1100_s14   ;;  %s767_s13 = sphi %s813_s13, %s1099_s13   ;;  %s763_s12 = sphi %s811_s12, %s1098_s12  }
   0xb   : > { %s38_s20 = sadd.s32 1, %s779_s16  ;;  %s47_s21 = sadd.s32 1, %s771_s14 }
   0xc   : > { %p40_p0 = scmp.ge.s32.totalorder %s38_s20, 2  ;;  %p54_p1 = scmp.ne.s32.totalorder %s771_s14, %s767_s13 }
   0xd   : > { %p55_p2 = scmp.eq.s32.totalorder %s783_s17, 0  ;;  %p60_p3 = scmp.ne.s32.totalorder %s767_s13, %s763_s12 }
   0xe   : > { %s1104_s20 = smov (%p40_p0, %s38_s20), 0  ;;  %p61_p5 = scmp.eq.s32.totalorder %s487_s18, 0 }
   0xf   : > { %p852_p4 = por %p55_p2, %p54_p1  ;;  %s44_s23 = ssub.s32 %s779_s16, %s1104_s20 }
  0x10   : > { %p112_p6 = scmp.eq.s32.totalorder %s487_s18, 1  ;;  %p45_p7 = scmp.eq.s32.totalorder %s44_s23, 0 }
  0x11   : > { %p858_p8 = por %p61_p5, %p60_p3  ;;  %p118_p10 = scmp.eq.s32.totalorder %s488_s19, 1 }
  0x12   : > { %p862_p9 = por %p112_p6, %p54_p1  ;;  %p536_p13 = scmp.lt.s32.totalorder %s783_s17, 2 }
  0x13   : > { %s1088_s24 = scalar_select %p858_p8, 1, 0 }
  0x14   : > { %s1089_s25 = scalar_select %p862_p9, 1, 0 }
  0x15   : > { %s867_s26 = scalar_select %p45_p7, %s771_s14, %s47_s21  }
  0x16   : > { %p869_p11 = por %p118_p10, %p60_p3  ;;  %s876_s28 = sand.u32 1, %s771_s14  }
  0x17   : > { %s491_s29 = sshll.u32 %s876_s28, 5  ;;  %s512_s30 = sshll.u32 %s779_s16, 9 }
  0x18   : > { %s1090_s27 = scalar_select %p869_p11, 1, 0 }
  0x19   : > { %s885_s6 = scalar_lea.hbm %s1081_s0, %s512_s30  ;;  %s168_s7 = scalar_lea.vmem [#allocation2], %s491_s29 }
  0x1a   : > { %s176_s8 = sshll.u32 %s168_s7, 4  ;;  %p893_p0 = pnand %p536_p13, %p852_p4  ;;  %s889_s8 = int_to_ptr.vmem [resolvable:$true] %s176_s8 }
  0x1b   : > { %s165_s10 = scalar_lea.sflag [#allocation3], %s876_s28  ;;  %s605_s11 = scalar_lea.hbm %s885_s6, 512 }
  0x1c   : > { %p606_p2 = scmp.ne.s32.totalorder %s885_s6, %s605_s11  ;;  %p607_p3 = pneg %p893_p0 }
  0x1d   : > { %s610_s21 = scalar_lea.hbm %s1081_s0, 1024  ;;  %p611_p4 = scmp.lt.u32.totalorder %s885_s6, %s1081_s0 }
  0x1e   : > { %p608_p5 = pnand %p607_p3, %p606_p2  ;;  %p612_p7 = scmp.lt.u32.totalorder %s610_s21, %s605_s11 }
  0x1f   : > { %p614_p13 = scmp.lt.u32.totalorder %s605_s11, %s885_s6 }
  0x20   : > { %p609_p6 = pneg %p608_p5  ;;  %p613_p10 = por %p612_p7, %p611_p4 }
  0x22   : > { %p615_p12 = por %p614_p13, %p613_p10 }
  0x24   : > { %p616_p1 = pnand %p615_p12, %p609_p6 }
  0x26   : > { %619 = shalt.err (!%p616_p1)
}
  0x27   : > { %s620_s4 = scalar_lea.vmem %s889_s8, 512  ;;  %s785_s5 = smov [#allocation2]  }
  0x28   : > { %p621_p2 = scmp.ne.s32.totalorder %s889_s8, %s620_s4  ;;  %s625_s7 = sshll.u32 %s785_s5, 4  ;;  %s626_s7 = int_to_ptr.vmem [resolvable:$false] %s625_s7 }
  0x29   : > { %s627_s18 = scalar_lea.vmem %s626_s7, 1024  ;;  %p628_p9 = scmp.lt.s32.totalorder %s889_s8, %s626_s7 }
  0x2a   : > { %p623_p5 = pnand %p621_p2, %p607_p3  ;;  %p629_p4 = scmp.lt.s32.totalorder %s627_s18, %s620_s4 }
  0x2c   : > { %p624_p11 = pneg %p623_p5  ;;  %p630_p7 = por %p629_p4, %p628_p9 }
  0x2e   : > { %p631_p10 = pnand %p630_p7, %p624_p11 }
  0x30   : > { %634 = shalt.err (!%p631_p10)
}
  0x31   : > { %s786_s11 = smov 128   ;;  %s787_s19 = smov 8  }
  0x32   : > { %525 = dma.hbm_to_vmem [thread:$0]  (!%p893_p0), %s885_s6, 512, %s889_s8, %s165_s10, %s786_s11, %s786_s11, %s787_s19  }
  0x33   : > { %p206_p9 = scmp.lt.s32.totalorder %s783_s17, 3  ;;  %s935_s23 = scalar_lea.hbm %s1082_s1, %s512_s30 }
  0x34   : > { %p1092_p11 = scmp.ge.s32.totalorder %s783_s17, 1  ;;  %s190_s5 = scalar_lea.vmem [#allocation5], %s491_s29 }
  0x35   : > { %s198_s7 = sshll.u32 %s190_s5, 4  ;;  %s187_s6 = scalar_lea.sflag [#allocation6], %s876_s28  ;;  %s945_s7 = int_to_ptr.vmem [resolvable:$true] %s198_s7 }
  0x36   : > { %p939_p12 = pnand %p1092_p11, %p206_p9  ;;  %s635_s8 = scalar_lea.hbm %s935_s23, 512 }
  0x37   : > { %p636_p1 = scmp.ne.s32.totalorder %s935_s23, %s635_s8  ;;  %s640_s18 = scalar_lea.hbm %s1082_s1, 1024 }
  0x38   : > { %p641_p2 = scmp.lt.u32.totalorder %s935_s23, %s1082_s1  ;;  %p642_p5 = scmp.lt.u32.totalorder %s640_s18, %s635_s8 }
  0x39   : > { %p638_p6 = pnand %p636_p1, %p607_p3  ;;  %p644_p7 = scmp.lt.u32.totalorder %s635_s8, %s935_s23 }
  0x3a   : > { %p643_p4 = por %p642_p5, %p641_p2 }
  0x3b   : > { %p639_p13 = pneg %p638_p6 }
  0x3c   : > { %p645_p10 = por %p644_p7, %p643_p4 }
  0x3e   : > { %p646_p9 = pnand %p645_p10, %p639_p13 }
  0x40   : > { %649 = shalt.err (!%p646_p9)
}
  0x41   : > { %s650_s29 = scalar_lea.vmem %s945_s7, 512  ;;  %s788_s5 = smov [#allocation5]  }
  0x42   : > { %p651_p11 = scmp.ne.s32.totalorder %s945_s7, %s650_s29  ;;  %s655_s30 = sshll.u32 %s788_s5, 4  ;;  %s656_s30 = int_to_ptr.vmem [resolvable:$false] %s655_s30 }
  0x43   : > { %s657_s10 = scalar_lea.vmem %s656_s30, 1024  ;;  %p658_p8 = scmp.lt.s32.totalorder %s945_s7, %s656_s30 }
  0x44   : > { %p653_p1 = pnand %p651_p11, %p607_p3  ;;  %p659_p2 = scmp.lt.s32.totalorder %s657_s10, %s650_s29 }
  0x46   : > { %p654_p6 = pneg %p653_p1  ;;  %p660_p5 = por %p659_p2, %p658_p8 }
  0x48   : > { %p661_p4 = pnand %p660_p5, %p654_p6 }
  0x4a   : > { %664 = shalt.err (!%p661_p4)
}
  0x4b   : > { %528 = dma.hbm_to_vmem [thread:$0]  (!%p893_p0), %s935_s23, 512, %s945_s7, %s187_s6, %s786_s11, %s786_s11, %s787_s19  }
  0x4c   : > { %210 = sbr.rel (%p939_p12) target bundleno = 159 (0x9f), region = 28  ;;  %s979_s8 = sand.u32 (!%p939_p12), 1, %s767_s13  }
  0x4d   : > { %s498_s18 = sshll.u32 (!%p939_p12), %s979_s8, 5  ;;  %s213_s21 = scalar_lea.sflag (!%p939_p12), [#allocation3], %s979_s8 }
  0x4e   : > { %s216_s9 = scalar_lea.vmem (!%p939_p12), [#allocation2], %s498_s18  ;;  %p1094_p8 = scmp.ne.s32.totalorder (!%p939_p12), %s1088_s24, 0 }
  0x53   : > { %746 = dma.done.wait (%p1094_p8), %s213_s21, 512  }
  0x54   : > { %748 = vsyncadd (%p1094_p8), %s213_s21, 4294966784  ;;  %s222_s28 = scalar_lea.sflag [#allocation6], %s979_s8  ;;  %s988_s11 = scalar_lea.vmem [#allocation5], %s498_s18 }
  0x55   : > { %750 = dma.done.wait (%p1094_p8), %s222_s28, 512  }
  0x56   : > { %752 = vsyncadd (%p1094_p8), %s222_s28, 4294966784  ;;  %v268_v0 = vld [vmem:[%s216_s9] sm:$0xff]  ;;  %v269_v1 = vld [vmem:[%s216_s9 + $0x8] sm:$0xff]  ;;  %s500_s24 = sshll.u32 %s979_s8, 3  ;;  %s508_s19 = sshll.u32 %s775_s15, 7 }
  0x57   : > { %v270_v2 = vld [vmem:[%s216_s9 + $0x10] sm:$0xff]  ;;  %v271_v3 = vld [vmem:[%s216_s9 + $0x18] sm:$0xff]  ;;  %v502_v4 = vmul.f32 -1.442695, %v268_v0  ;;  %v503_v5 = vmul.f32 -1.442695, %v269_v1  ;;  %s1003_s5 = scalar_lea.hbm %s1083_s2, %s508_s19  ;;  %s1010_s15 = scalar_lea.hbm %s1084_s3, %s508_s19 }
  0x58   : > { %v504_v6 = vmul.f32 -1.442695, %v270_v2  ;;  %v505_v7 = vmul.f32 -1.442695, %v271_v3  ;;  %v296_v16 = vld [vmem:[%s988_s11] sm:$0xff]  ;;  %v297_v17 = vld [vmem:[%s988_s11 + $0x8] sm:$0xff] }
  0x59   : > { %589 = vpow2.f32 %v502_v4  ;;  %v298_v19 = vld [vmem:[%s988_s11 + $0x10] sm:$0xff]  ;;  %v299_v21 = vld [vmem:[%s988_s11 + $0x18] sm:$0xff]  ;;  %s250_s23 = scalar_lea.vmem [#allocation7], %s500_s24  ;;  %s257_s7 = scalar_lea.vmem [#allocation8], %s500_s24 }
  0x5a   : > { %591 = vpow2.f32 %v503_v5  ;;  %s339_s4 = sshll.u32 %s250_s23, 4  ;;  %s352_s6 = sshll.u32 %s257_s7, 4  ;;  %s1005_s4 = int_to_ptr.vmem [resolvable:$true] %s339_s4  ;;  %s1012_s6 = int_to_ptr.vmem [resolvable:$true] %s352_s6 }
  0x5b   : > { %593 = vpow2.f32 %v504_v6  ;;  %s321_s18 = scalar_lea.sflag [#allocation4], %s979_s8  ;;  %s665_s21 = scalar_lea.vmem %s1005_s4, 128 }
  0x5c   : > { %595 = vpow2.f32 %v505_v7  ;;  %p666_p0 = scmp.ne.s32.totalorder %s1005_s4, %s665_s21  ;;  %p1095_p3 = scmp.ne.s32.totalorder %s1089_s25, 0 }
  0x5d   : > { %s789_s9 = smov [#allocation7]  }
  0x5e   : > { %p667_p12 = pnand %p666_p0, %p1095_p3  ;;  %s669_s28 = sshll.u32 %s789_s9, 4  ;;  %s670_s28 = int_to_ptr.vmem [resolvable:$false] %s669_s28 }
  0x5f   : > { %s671_s11 = scalar_lea.vmem %s670_s28, 256  ;;  %p672_p7 = scmp.lt.s32.totalorder %s1005_s4, %s670_s28 }
  0x60   : > { %p668_p13 = pneg %p667_p12  ;;  %p673_p10 = scmp.lt.s32.totalorder %s671_s11, %s665_s21 }
  0x62   : > { %p674_p9 = por %p673_p10, %p672_p7 }
  0x63   : > { %v590_v8 = vpop.eup %589 }
  0x64   : > { %v592_v9 = vpop.eup %591  ;;  %v284_v10 = vadd.f32 1.0, %v590_v8  ;;  %p675_p11 = pnand %p674_p9, %p668_p13 }
  0x65   : > { %v594_v11 = vpop.eup %593  ;;  %v285_v12 = vadd.f32 1.0, %v592_v9 }
  0x66   : > { %v596_v13 = vpop.eup %595  ;;  %v286_v14 = vadd.f32 1.0, %v594_v11  ;;  %597 = vrcp.f32 %v284_v10 }
  0x67   : > { %v287_v15 = vadd.f32 1.0, %v596_v13  ;;  %599 = vrcp.f32 %v285_v12 }
  0x68   : > { %601 = vrcp.f32 %v286_v14 }
  0x69   : > { %603 = vrcp.f32 %v287_v15 }
  0x70   : > { %v598_v18 = vpop.eup %597 }
  0x71   : > { %v600_v20 = vpop.eup %599  ;;  %v301_v22 = vmul.f32 %v598_v18, %v296_v16  ;;  %v311_v23 = vadd.f32 %v598_v18, %v296_v16 }
  0x72   : > { %v602_v24 = vpop.eup %601  ;;  %v302_v25 = vmul.f32 %v600_v20, %v297_v17  ;;  %v312_v26 = vadd.f32 %v600_v20, %v297_v17 }
  0x73   : > { %v604_v27 = vpop.eup %603  ;;  %v303_v28 = vmul.f32 %v602_v24, %v298_v19  ;;  %v313_v29 = vadd.f32 %v602_v24, %v298_v19 }
  0x74   : > { %v304_v30 = vmul.f32 %v604_v27, %v299_v21  ;;  %v305_v31 = vadd.f32 %v302_v25, %v301_v22  ;;  %v314_v32 = vadd.f32 %v604_v27, %v299_v21  ;;  %v315_v33 = vadd.f32 %v312_v26, %v311_v23 }
  0x76   : > { %v306_v34 = vadd.f32 %v305_v31, %v303_v28  ;;  %v316_v35 = vadd.f32 %v315_v33, %v313_v29 }
  0x78   : > { %v307_v36 = vadd.f32 %v306_v34, %v304_v30  ;;  %v317_v37 = vadd.f32 %v316_v35, %v314_v32 }
  0x7a   : > { %309 = vst [vmem:[%s250_s23] sm:$0xff] %v307_v36  ;;  %319 = vst [vmem:[%s257_s7] sm:$0xff] %v317_v37 }
  0x7b   : > { %678 = shalt.err (!%p675_p11)
}
  0x7c   : > { %s679_s24 = scalar_lea.hbm %s1003_s5, 128  ;;  %s683_s7 = scalar_lea.hbm %s1083_s2, 256 }
  0x7d   : > { %p680_p1 = scmp.ne.s32.totalorder %s1003_s5, %s679_s24  ;;  %p684_p5 = scmp.lt.u32.totalorder %s1003_s5, %s1083_s2 }
  0x7e   : > { %p685_p4 = scmp.lt.u32.totalorder %s683_s7, %s679_s24  ;;  %p687_p0 = scmp.lt.u32.totalorder %s679_s24, %s1003_s5 }
  0x7f   : > { %p681_p6 = pnand %p680_p1, %p1095_p3 }
  0x80   : > { %p686_p8 = por %p685_p4, %p684_p5 }
  0x81   : > { %p682_p2 = pneg %p681_p6 }
  0x82   : > { %p688_p12 = por %p687_p0, %p686_p8 }
  0x84   : > { %p689_p13 = pnand %p688_p12, %p682_p2 }
  0x86   : > { %692 = shalt.err (!%p689_p13)
}
  0x87   : > { %518 = dma.vmem_to_hbm [thread:$0]  (%p1095_p3), %s1005_s4, 128, %s1003_s5, %s321_s18  }
  0x88   : > { %s326_s30 = scalar_lea.sflag [#allocation9], %s979_s8  ;;  %s693_s10 = scalar_lea.vmem %s1012_s6, 128 }
  0x89   : > { %p694_p7 = scmp.ne.s32.totalorder %s1012_s6, %s693_s10  ;;  %s790_s21 = smov [#allocation8]  }
  0x8a   : > { %s697_s9 = sshll.u32 %s790_s21, 4  ;;  %s698_s9 = int_to_ptr.vmem [resolvable:$false] %s697_s9 }
  0x8b   : > { %p695_p10 = pnand %p694_p7, %p1095_p3  ;;  %s699_s28 = scalar_lea.vmem %s698_s9, 256 }
  0x8c   : > { %p700_p11 = scmp.lt.s32.totalorder %s1012_s6, %s698_s9  ;;  %p701_p1 = scmp.lt.s32.totalorder %s699_s28, %s693_s10 }
  0x8d   : > { %p696_p9 = pneg %p695_p10 }
  0x8e   : > { %p702_p6 = por %p701_p1, %p700_p11 }
  0x90   : > { %p703_p2 = pnand %p702_p6, %p696_p9 }
  0x92   : > { %706 = shalt.err (!%p703_p2)
}
  0x93   : > { %s707_s8 = scalar_lea.hbm %s1010_s15, 128  ;;  %s711_s18 = scalar_lea.hbm %s1084_s3, 256 }
  0x94   : > { %p708_p5 = scmp.ne.s32.totalorder %s1010_s15, %s707_s8  ;;  %p712_p0 = scmp.lt.u32.totalorder %s1010_s15, %s1084_s3 }
  0x95   : > { %p713_p12 = scmp.lt.u32.totalorder %s711_s18, %s707_s8  ;;  %p715_p7 = scmp.lt.u32.totalorder %s707_s8, %s1010_s15 }
  0x96   : > { %p709_p4 = pnand %p708_p5, %p1095_p3 }
  0x97   : > { %p714_p13 = por %p713_p12, %p712_p0 }
  0x98   : > { %p710_p8 = pneg %p709_p4 }
  0x99   : > { %p716_p10 = por %p715_p7, %p714_p13 }
  0x9b   : > { %p717_p9 = pnand %p716_p10, %p710_p8 }
  0x9d   : > { %720 = shalt.err (!%p717_p9)
}
  0x9e   : > { %519 = dma.vmem_to_hbm [thread:$0]  (%p1095_p3), %s1012_s6, 128, %s1010_s15, %s326_s30  }
  0x9f PF: > { %s364_s19 = sand.u32 1, %s763_s12   ;;  %p1096_p11 = scmp.ne.s32.totalorder %s1090_s27, 0 }
  0xa0   : > { %p1097_p1 = scmp.ge.s32.totalorder %s783_s17, 2  ;;  %s365_s23 = scalar_lea.sflag [#allocation4], %s364_s19 }
  0xa2   : > { %p530_p6 = pnand %p1097_p1, %p1096_p11 }
  0xa4   : > { %754 = dma.done.wait (!%p530_p6), %s365_s23, 128  }
  0xa5   : > { %756 = vsyncadd (!%p530_p6), %s365_s23, 4294967168  ;;  %s374_s7 = scalar_lea.sflag [#allocation9], %s364_s19 }
  0xa6   : > { %758 = dma.done.wait (!%p530_p6), %s374_s7, 128  }
  0xa7   : > { %760 = vsyncadd (!%p530_p6), %s374_s7, 4294967168  ;;  %s26_s17 = sadd.s32 1, %s783_s17   ;;  %s1098_s12 = smov %s767_s13 }
  0xa8   : > { %p23_p2 = scmp.ge.s32.totalorder %s26_s17, 4   ;;  %s1099_s13 = smov %s771_s14 }
  0xa9   : > { %s1100_s14 = smov %s867_s26  ;;  %s1101_s15 = smov %s779_s16 }
  0xaa   : > { %s1102_s16 = smov %s1104_s20  ;;  %25 = sbr.rel (!%p23_p2) target bundleno = 10 (0xa), region = 107 }
  0xb1   :  { %379 = vsyncpa [#allocation3], 1 }
  0xb2   :  { %381 = vsyncpa [#allocation3 + $0x1], 1 }
  0xb3   :  { %382 = vsyncpa [#allocation6], 1 }
  0xb4   :  { %384 = vsyncpa [#allocation6 + $0x1], 1 }
  0xb5   :  { %385 = vsyncpa [#allocation4], 1 }
  0xb6   :  { %387 = vsyncpa [#allocation4 + $0x1], 1 }
  0xb7   :  { %388 = vsyncpa [#allocation9], 1 }
  0xb8   :  { %390 = vsyncpa [#allocation9 + $0x1], 1 }

</bundles_post_ra>
